<compile_context>
chip_gen: v5e
topology: v5e:2x2
jax: 0.10.0
libtpu: 0.0.40
codegen_flags: <defaults>
</compile_context>

<pallas_src>
import functools

import jax
import jax.numpy as jnp
from jax.experimental import pallas as pl
from jax.experimental.pallas import tpu as pltpu


_LANES = 128


def _sublane_multiple(dtype) -> int:
    # sublane packing granularity: 8 rows for 32-bit, 16 for 16-bit, 32 for 8-bit
    itemsize = jnp.dtype(dtype).itemsize
    return {4: 8, 2: 16, 1: 32}.get(itemsize, 8)


def _tpu_generation():
    """Best-effort TPU generation detection: 'v5e' | 'v6e' | 'v7x' | None."""
    try:
        kind = jax.devices()[0].device_kind.lower()
    except Exception:
        return None
    if "v5 lite" in kind or "v5lite" in kind or "v5e" in kind:
        return "v5e"
    if "v6" in kind:
        return "v6e"
    if "7" in kind:
        return "v7x"
    return None


def _copy_tuning(gen):
    """(max_block_bytes, vmem_limit_bytes) for the streaming copy."""
    if gen in ("v5e", "v6e"):                 # 128 MiB physical VMEM
        return 8 * 1024 * 1024, 64 * 1024 * 1024
    return 4 * 1024 * 1024, 32 * 1024 * 1024  # v7x (64 MiB) or unknown: conservative


def _head_tuning(gen):
    """(per-step VMEM byte budget, vmem_limit_bytes) for the classifier head."""
    if gen in ("v5e", "v6e"):
        return 48 * 1024 * 1024, 64 * 1024 * 1024
    return 20 * 1024 * 1024, 32 * 1024 * 1024


# ---------------------------------------------------------------------------
# ViewLayer: pure metadata (no kernel).  A materializing copy only on request.
# ---------------------------------------------------------------------------
def view_layer(x, dim=-1):
    """ViewLayer.forward: x.view(x.size(0), -1).  Flatten is metadata-only;
    no pallas_call, no HBM traffic."""
    b = x.shape[0]
    flat = 1
    for s in x.shape[1:]:
        flat *= s
    if dim != -1:
        assert dim == flat, "requested view size must match number of elements"
    return jnp.reshape(x, (b, flat))


def _copy_kernel(x_ref, o_ref):
    o_ref[...] = x_ref[...]


def view_layer_copy(x, dim=-1):
    """ViewLayer with a materializing copy, for the rare case where a layout
    boundary is genuinely required.  Streams multi-MiB blocks; any non-aligned
    tail is handled by Pallas' masked edge block inside the pallas_call
    (no jnp.pad / post-slice extra HBM passes)."""
    b = x.shape[0]
    flat = 1
    for s in x.shape[1:]:
        flat *= s
    if dim != -1:
        assert dim == flat, "requested view size must match number of elements"

    gen = _tpu_generation()
    max_block_bytes, vmem_limit = _copy_tuning(gen)
    itemsize = jnp.dtype(x.dtype).itemsize
    sub = _sublane_multiple(x.dtype)
    total = b * flat

    if total % _LANES == 0:
        # Lane/sublane-dense (rows, 128) view: every vreg and vst fully used.
        rows = total // _LANES
        x2d = jnp.reshape(x, (rows, _LANES))
        row_bytes = _LANES * itemsize
        max_rows = max(sub, (max_block_bytes // row_bytes) // sub * sub)
        block_rows = min(max_rows, pl.cdiv(rows, sub) * sub)
        # Prefer >= 2 "parallel" steps when there is more than one minimal tile
        # so v7x's two TensorCores split the copy (no effect on v5e/v6e).
        if rows > sub and pl.cdiv(rows, block_rows) < 2:
            block_rows = pl.cdiv(pl.cdiv(rows, 2), sub) * sub
        grid = (pl.cdiv(rows, block_rows),)
        block = (block_rows, _LANES)
        out_shape2d = (rows, _LANES)
        index_map = lambda i: (i, 0)
    else:
        # Misaligned total: keep the natural (b, flat) view and tile the lane
        # axis in 128-multiples; Pallas masks the partial edge block.
        x2d = jnp.reshape(x, (b, flat))
        max_cols = max(_LANES,
                       (max_block_bytes // (b * itemsize)) // _LANES * _LANES)
        block_cols = min(max_cols, pl.cdiv(flat, _LANES) * _LANES)
        if flat > _LANES and pl.cdiv(flat, block_cols) < 2:
            block_cols = pl.cdiv(pl.cdiv(flat, 2), _LANES) * _LANES
        grid = (pl.cdiv(flat, block_cols),)
        block = (b, block_cols)
        out_shape2d = (b, flat)
        index_map = lambda i: (0, i)

    out = pl.pallas_call(
        _copy_kernel,
        out_shape=jax.ShapeDtypeStruct(out_shape2d, x.dtype),
        grid_spec=pltpu.PrefetchScalarGridSpec(
            num_scalar_prefetch=0,
            grid=grid,
            in_specs=[pl.BlockSpec(block, index_map)],
            out_specs=pl.BlockSpec(block, index_map),
        ),
        compiler_params=pltpu.CompilerParams(
            dimension_semantics=("parallel",),
            vmem_limit_bytes=vmem_limit,
        ),
        # Identical in/out BlockSpecs per grid step -> safe to alias; no second
        # HBM buffer for a pure identity copy.  Default double-buffering kept:
        # the copy is HBM-bandwidth-bound, deeper buffering only costs VMEM.
        input_output_aliases={0: 0},
    )(x2d)
    return jnp.reshape(out, (b, flat))


# ---------------------------------------------------------------------------
# Fused SumaryBlock classifier head:
#   BatchNorm2d (inference stats) -> ReLU -> global AvgPool -> flatten -> Linear
#   Consumes NCHW directly; tiled over channels with an f32 VMEM accumulator.
# ---------------------------------------------------------------------------
def _head_kernel(x_ref, scale_ref, shift_ref, w_ref, b_ref, o_ref, acc_ref, *,
                 inv_hw, compute_dtype):
    # x_ref:       (B, C_tile, H*W)  NCHW activation tile (no transpose needed)
    # scale/shift: (1, C_tile, 1)    folded BatchNorm scale / shift
    # w_ref:       (C_tile, nclass)  Linear weight slice (pre-transposed)
    # b_ref:       (1, nclass)       Linear bias
    # acc_ref:     (B, nclass) f32   running partial result across C tiles
    step = pl.program_id(0)

    @pl.when(step == 0)
    def _():
        acc_ref[...] = jnp.zeros_like(acc_ref)

    x = x_ref[...].astype(compute_dtype)
    y = x * scale_ref[...].astype(compute_dtype) \
        + shift_ref[...].astype(compute_dtype)          # BatchNorm (folded)
    y = jnp.maximum(y, 0)                               # ReLU
    # Global average pool: lane-axis reduce, accumulated in f32.
    pooled = jnp.sum(y.astype(jnp.float32), axis=2, keepdims=True) * inv_hw
    # Partial Linear contraction for this C tile.  With B=2 the MXU would sit
    # >98% idle for this op, so it is done as an exact-f32 broadcast-multiply
    # followed by a sublane reduce on the VPU/XLU (also keeps the result
    # f32-accurate independent of MXU f32 pass configuration).
    acc_ref[...] += jnp.sum(pooled * w_ref[...][None, :, :], axis=1)

    @pl.when(step == pl.num_programs(0) - 1)
    def _():
        o_ref[...] = (acc_ref[...] + b_ref[...]).astype(o_ref.dtype)


def _pick_c_tile(C, per_c_row_elems, itemsize, budget_bytes):
    """Largest multiple-of-8 divisor of C whose double-buffered blocks fit the
    per-generation VMEM budget; prefers >= 2 grid steps so the input DMA
    overlaps the BN/ReLU/pool compute."""
    if C % 8 != 0:
        return C                          # full-dim block is always legal
    max_by_bytes = budget_bytes // max(1, 2 * per_c_row_elems * itemsize)
    cap = min(max_by_bytes, C // 2 if C >= 16 else C)
    cap = max(8, (cap // 8) * 8)
    for d in range(cap, 7, -8):
        if C % d == 0:
            return d
    return 8


def classifier_head(x_nchw, gamma, beta, running_mean, running_var, weight, bias,
                    *, eps=1e-5):
    """Fused SumaryBlock classifier (BN uses running statistics, i.e. the
    deployed inference-mode forward pass of the PyTorch module)."""
    B, C, H, W = x_nchw.shape
    nclass = weight.shape[0]
    assert weight.shape == (nclass, C)
    HW = H * W

    # Metadata-only reshape: stays NCHW-ordered -> no transpose, no extra HBM pass.
    x3 = jnp.reshape(x_nchw, (B, C, HW))

    gen = _tpu_generation()
    budget, vmem_limit = _head_tuning(gen)
    # bf16 activations keep BN/ReLU in bf16 on v6e/v7x (bf16 VPU); v5e upcasts.
    if x_nchw.dtype == jnp.bfloat16 and gen != "v5e":
        compute_dtype = jnp.bfloat16
    else:
        compute_dtype = jnp.float32

    itemsize = jnp.dtype(x_nchw.dtype).itemsize
    # Bytes moved per channel row per step: activation (B*HW) + weight (nclass).
    c_tile = _pick_c_tile(C, B * HW + nclass, itemsize, budget)
    if C % c_tile != 0:
        c_tile = C
    grid = (C // c_tile,)

    scale = (gamma.astype(jnp.float32)
             / jnp.sqrt(running_var.astype(jnp.float32) + eps))
    shift = beta.astype(jnp.float32) - running_mean.astype(jnp.float32) * scale
    scale3 = jnp.reshape(scale, (1, C, 1))
    shift3 = jnp.reshape(shift, (1, C, 1))
    w_t = jnp.transpose(weight).astype(jnp.float32)     # (C, nclass); tiny, one-time
    b2 = jnp.reshape(bias, (1, nclass)).astype(jnp.float32)

    kernel = functools.partial(_head_kernel, inv_hw=1.0 / float(HW),
                               compute_dtype=compute_dtype)

    return pl.pallas_call(
        kernel,
        out_shape=jax.ShapeDtypeStruct((B, nclass), jnp.float32),
        grid_spec=pltpu.PrefetchScalarGridSpec(
            num_scalar_prefetch=0,
            grid=grid,
            in_specs=[
                pl.BlockSpec((B, c_tile, HW), lambda i: (0, i, 0)),
                pl.BlockSpec((1, c_tile, 1), lambda i: (0, i, 0)),
                pl.BlockSpec((1, c_tile, 1), lambda i: (0, i, 0)),
                pl.BlockSpec((c_tile, nclass), lambda i: (i, 0)),
                pl.BlockSpec((1, nclass), lambda i: (0, 0)),
            ],
            out_specs=pl.BlockSpec((B, nclass), lambda i: (0, 0)),
            scratch_shapes=[pltpu.VMEM((B, nclass), jnp.float32)],
        ),
        compiler_params=pltpu.CompilerParams(
            # The channel axis is a reduction into acc_ref -> "arbitrary".
            # TODO(synk): a second "parallel" batch/C axis could feed v7x's
            # second TensorCore; at B=2 the head is a tiny fraction of the
            # network, so it is left single-core.
            dimension_semantics=("arbitrary",),
            vmem_limit_bytes=vmem_limit,
        ),
    )(x3, scale3, shift3, w_t, b2)


def classifier_head_ref(x, gamma, beta, mean, var, weight, bias, eps=1e-5):
    xf = x.astype(jnp.float32)
    inv = gamma / jnp.sqrt(var + eps)
    y = (xf - mean[None, :, None, None]) * inv[None, :, None, None] \
        + beta[None, :, None, None]
    y = jnp.maximum(y, 0.0)
    pooled = jnp.mean(y, axis=(2, 3))
    out = jnp.dot(pooled, weight.T, precision=jax.lax.Precision.HIGHEST)
    return out + bias[None, :]


if __name__ == "__main__":
    key = jax.random.PRNGKey(0)
    k1, k2, k3, k4, k5, k6, k7, k8, k9 = jax.random.split(key, 9)

    # --- ViewLayer: metadata-only flatten (kernel elided per review) ---
    B, C, H, W = 2, 4, 16, 16
    x = jax.random.normal(k1, (B, C, H, W), dtype=jnp.float32)
    y = jax.block_until_ready(view_layer(x, dim=-1))
    ref = jnp.reshape(x, (B, C * H * W))
    assert y.shape == ref.shape and y.dtype == ref.dtype
    assert bool(jnp.all(y == ref))

    # --- ViewLayer materializing copy (layout boundary): aligned path ---
    y_cp = jax.block_until_ready(view_layer_copy(x, dim=-1))
    assert bool(jnp.all(y_cp == ref))

    # Misaligned total (600 elements): edge block masked inside the kernel,
    # no pre-pad / post-slice HBM passes.
    x_odd = jax.random.normal(k2, (2, 3, 10, 10), dtype=jnp.float32)
    y_odd = jax.block_until_ready(view_layer_copy(x_odd))
    assert bool(jnp.all(y_odd == jnp.reshape(x_odd, (2, 300))))

    # --- Fused SumaryBlock classifier head (NCHW-native, tiled over C) ---
    Bh, Ch, Hh, Wh, nclass = 2, 128, 8, 8, 128
    xh = jax.random.normal(k3, (Bh, Ch, Hh, Wh), dtype=jnp.float32)
    gamma = 1.0 + 0.1 * jax.random.normal(k4, (Ch,), dtype=jnp.float32)
    beta = 0.1 * jax.random.normal(k5, (Ch,), dtype=jnp.float32)
    running_mean = 0.1 * jax.random.normal(k6, (Ch,), dtype=jnp.float32)
    running_var = jnp.abs(1.0 + 0.1 * jax.random.normal(k7, (Ch,), dtype=jnp.float32))
    weight = 0.05 * jax.random.normal(k8, (nclass, Ch), dtype=jnp.float32)
    bias = 0.05 * jax.random.normal(k9, (nclass,), dtype=jnp.float32)

    out = jax.block_until_ready(
        classifier_head(xh, gamma, beta, running_mean, running_var, weight, bias))
    out_ref = classifier_head_ref(xh, gamma, beta, running_mean, running_var,
                                  weight, bias)
    assert out.shape == (Bh, nclass)
    # Tight tolerance: the whole path is f32-accurate, so it must match ~1e-5.
    assert bool(jnp.allclose(out, out_ref, rtol=1e-5, atol=1e-5))

    print("KERNEL_OK")
</pallas_src>

<mosaic_0001>
module attributes {stable_mosaic.version = 11 : i64} {
  func.func @_copy_kernel(%arg0: i32, %arg1: memref<8x128xf32, #tpu.memory_space<vmem>>, %arg2: memref<8x128xf32, #tpu.memory_space<vmem>>) attributes {dimension_semantics = [#tpu.dimension_semantics<parallel>], iteration_bounds = array<i64: 2>, scalar_prefetch = 0 : i64, scratch_operands = 0 : i64, tpu.core_type = #tpu.core_type<tc>, window_params = [{transform_indices = @transform_0, window_bounds = array<i64: 8, 128>}, {transform_indices = @transform_1, window_bounds = array<i64: 8, 128>}]} {
    %c0 = arith.constant 0 : index
    %c0_0 = arith.constant 0 : index
    %0 = vector.load %arg1[%c0, %c0_0] : memref<8x128xf32, #tpu.memory_space<vmem>>, vector<8x128xf32>
    %c0_1 = arith.constant 0 : index
    %c0_2 = arith.constant 0 : index
    %1 = vector.load %arg2[%c0_1, %c0_2] : memref<8x128xf32, #tpu.memory_space<vmem>>, vector<8x128xf32>
    tpu.vector_store %arg2[%c0_1, %c0_2], %0 {strides = array<i32>} : memref<8x128xf32, #tpu.memory_space<vmem>>, vector<8x128xf32>,
    return
  }
  func.func @transform_0(%arg0: i32) -> (i32, i32) {
    %c0_i32 = arith.constant 0 : i32
    %c0_i32_0 = arith.constant 0 : i32
    return %arg0, %c0_i32 : i32, i32
  }
  func.func @transform_1(%arg0: i32) -> (i32, i32) {
    %c0_i32 = arith.constant 0 : i32
    %c0_i32_0 = arith.constant 0 : i32
    return %arg0, %c0_i32 : i32, i32
  }
}

</mosaic_0001>

<bundles_post_ra>
// kernel: tpu_custom_call.1
= control target key start
LH: loop header
LB: loop body
LE: loop exit
PB: predicated region body
PF: predicated region fallthrough
CT: control target
= control target key end

     0   :  { %6 = vsyncpa [#allocation3], 0  ;;  %s515_s0 = inlined_call_operand.hbm [shape: f32[16,128], index: 0, kind: input, shape index: {}, may-alias: {0,1}]   ;;  %s516_s1 = inlined_call_operand.hbm [shape: f32[16,128], index: 1, kind: output, shape index: {}, may-alias: {0,1}]  }
   0x1   :  { %8 = vsyncpa [#allocation3 + $0x1], 0 }
   0x2   :  { %9 = vsyncpa [#allocation4], 0 }
   0x3   :  { %11 = vsyncpa [#allocation4 + $0x1], 0  ;;  %s388_s6 = smov 0   ;;  %s390_s7 = smov 0  }
   0x4   :  { %s392_s8 = smov 0   ;;  %s394_s9 = smov 0  }
   0x5 LB: > { %s409_s10 = sadd.s32 4294967295, %s376_s9   ;;  %s222_s11 = sadd.s32 4294967294, %s376_s9   ;;  %s376_s9 = sphi %s394_s9, %s526_s9   ;;  %s372_s8 = sphi %s392_s8, %s525_s8   ;;  %s368_s7 = sphi %s390_s7, %s524_s7   ;;  %s364_s6 = sphi %s388_s6, %s523_s6  }
   0x6   : > { %s413_s12 = sadd.s32 1, %s376_s9   ;;  %s24_s13 = sadd.s32 1, %s372_s8 }
   0x7   : > { %s21_s14 = ssub.s32 %s376_s9, %s413_s12  ;;  %p31_p0 = scmp.ne.s32.totalorder %s372_s8, %s368_s7 }
   0x8   : > { %p22_p1 = scmp.eq.s32.totalorder %s21_s14, 0  ;;  %p32_p2 = scmp.eq.s32.totalorder %s376_s9, 0 }
   0x9   : > { %p37_p3 = scmp.ne.s32.totalorder %s368_s7, %s364_s6  ;;  %p38_p4 = scmp.eq.s32.totalorder %s409_s10, 0 }
   0xa   : > { %s425_s15 = scalar_select %p22_p1, %s372_s8, %s24_s13  }
   0xb   : > { %p427_p5 = por %p32_p2, %p31_p0  ;;  %p431_p6 = por %p38_p4, %p37_p3 }
   0xc   : > { %p61_p7 = scmp.eq.s32.totalorder %s409_s10, 1  ;;  %p67_p8 = scmp.eq.s32.totalorder %s222_s11, 1 }
   0xd   : > { %p246_p10 = scmp.lt.s32.totalorder %s376_s9, 2  ;;  %s87_s20 = sand.u32 1, %s372_s8  }
   0xe   : > { %p438_p11 = por %p61_p7, %p31_p0  ;;  %p442_p12 = por %p67_p8, %p37_p3 }
   0xf   : > { %s226_s21 = sshll.u32 %s376_s9, 3  ;;  %s225_s22 = sshll.u32 %s87_s20, 3 }
  0x10   : > { %s95_s25 = scalar_lea.hbm %s515_s0, %s226_s21  ;;  %s91_s27 = scalar_lea.vmem [#allocation2], %s225_s22 }
  0x11   : > { %s97_s26 = sshll.u32 %s95_s25, 4  ;;  %s99_s28 = sshll.u32 %s91_s27, 4  ;;  %s98_s26 = int_to_ptr.hbm [resolvable:$true] %s97_s26  ;;  %s100_s28 = int_to_ptr.vmem [resolvable:$true] %s99_s28 }
  0x12   : > { %p453_p13 = pnand %p246_p10, %p427_p5  ;;  %p227_p0 = scmp.ge.s32.totalorder %s376_s9, 1 }
  0x13   : > { %p104_p1 = scmp.lt.s32.totalorder %s376_s9, 3  ;;  %s88_s30 = scalar_lea.sflag [#allocation3], %s87_s20 }
  0x14   : > { %s280_s2 = sshra.s32 %s98_s26, 4  ;;  %p284_p3 = pneg %p453_p13  ;;  %s281_s2 = int_to_ptr.hbm [resolvable:$true] %s280_s2 }
  0x15   : > { %s282_s3 = scalar_lea.hbm %s281_s2, 8  ;;  %s287_s11 = scalar_lea.hbm %s515_s0, 16 }
  0x16   : > { %p283_p2 = scmp.ne.s32.totalorder %s281_s2, %s282_s3  ;;  %p288_p5 = scmp.lt.s32.totalorder %s281_s2, %s515_s0 }
  0x17   : > { %p289_p8 = scmp.lt.s32.totalorder %s287_s11, %s282_s3 }
  0x18   : > { %p285_p4 = pnand %p284_p3, %p283_p2 }
  0x19   : > { %p290_p10 = por %p289_p8, %p288_p5 }
  0x1a   : > { %p286_p7 = pneg %p285_p4 }
  0x1c   : > { %p291_p9 = pnand %p290_p10, %p286_p7 }
  0x1e   : > { %294 = shalt.err (!%p291_p9)
}
  0x1f   : > { %241 = dma.hbm_to_vmem [thread:$0]  (!%p453_p13), %s98_s26, 128, %s100_s28, %s88_s30  }
  0x20   : > { %p105_p2 = pnand %p227_p0, %p104_p1 }
  0x21   : > { %s474_s16 = sand.u32 (!%p105_p2), 1, %s368_s7  }
  0x22   : > { %108 = sbr.rel (%p105_p2) target bundleno = 55 (0x37), region = 24  ;;  %s228_s20 = sshll.u32 (!%p105_p2), %s474_s16, 3 }
  0x23   : > { %s111_s21 = scalar_lea.sflag (!%p105_p2), [#allocation3], %s474_s16  ;;  %s114_s22 = scalar_lea.vmem (!%p105_p2), [#allocation2], %s228_s20 }
  0x27   : > { %355 = dma.done.wait (%p431_p6), %s111_s21, 128  }
  0x28   : > { %357 = vsyncadd (%p431_p6), %s111_s21, 4294967168  ;;  %s231_s23 = sshll.u32 %s409_s10, 3  ;;  %s133_s27 = scalar_lea.vmem [#allocation5], %s228_s20  ;;  %v134_v0 = vld [vmem:[%s114_s22] sm:$0xff] }
  0x29   : > { %s147_s26 = scalar_lea.hbm %s516_s1, %s231_s23  ;;  %s149_s28 = sshll.u32 %s133_s27, 4  ;;  %135 = vst [vmem:[%s133_s27] sm:$0xff] %v134_v0  ;;  %s150_s28 = int_to_ptr.vmem [resolvable:$true] %s149_s28 }
  0x2a   : > { %s151_s29 = sshll.u32 %s147_s26, 4  ;;  %s137_s30 = scalar_lea.sflag [#allocation4], %s474_s16  ;;  %s152_s29 = int_to_ptr.hbm [resolvable:$true] %s151_s29 }
  0x2b   : > { %s324_s2 = sshra.s32 %s152_s29, 4  ;;  %s330_s4 = scalar_lea.hbm %s516_s1, 16  ;;  %s325_s2 = int_to_ptr.hbm [resolvable:$true] %s324_s2 }
  0x2c   : > { %s326_s17 = scalar_lea.hbm %s325_s2, 8  ;;  %p331_p0 = scmp.lt.s32.totalorder %s325_s2, %s516_s1 }
  0x2d   : > { %p327_p6 = scmp.ne.s32.totalorder %s325_s2, %s326_s17  ;;  %p332_p1 = scmp.lt.s32.totalorder %s330_s4, %s326_s17 }
  0x2f   : > { %p328_p9 = pnand %p327_p6, %p438_p11  ;;  %p333_p3 = por %p332_p1, %p331_p0 }
  0x31   : > { %p329_p13 = pneg %p328_p9 }
  0x33   : > { %p334_p4 = pnand %p333_p3, %p329_p13 }
  0x35   : > { %337 = shalt.err (!%p334_p4)
}
  0x36   : > { %236 = dma.vmem_to_hbm [thread:$0]  (%p438_p11), %s150_s28, 128, %s152_s29, %s137_s30  }
  0x37 PF: > { %s163_s13 = sand.u32 1, %s364_s6   ;;  %p522_p7 = scmp.ge.s32.totalorder %s376_s9, 2 }
  0x38   : > { %s164_s14 = scalar_lea.sflag [#allocation4], %s163_s13 }
  0x39   : > { %p243_p5 = pnand %p522_p7, %p442_p12 }
  0x3b   : > { %p244_p8 = pneg %p243_p5 }
  0x3d   : > { %359 = dma.done.wait (%p244_p8), %s164_s14, 128  }
  0x3e   : > { %361 = vsyncadd (%p244_p8), %s164_s14, 4294967168  ;;  %p14_p10 = scmp.ge.s32.totalorder %s413_s12, 4   ;;  %s523_s6 = smov %s368_s7 }
  0x3f   : > { %s524_s7 = smov %s372_s8  ;;  %s525_s8 = smov %s425_s15 }
  0x40   : > { %s526_s9 = smov %s413_s12  ;;  %16 = sbr.rel (!%p14_p10) target bundleno = 5 (0x5), region = 69 }
  0x45   :  { %170 = vsyncpa [#allocation3], 1 }
  0x46   :  { %172 = vsyncpa [#allocation3 + $0x1], 1 }
  0x47   :  { %173 = vsyncpa [#allocation4], 1 }
  0x48   :  { %175 = vsyncpa [#allocation4 + $0x1], 1 }

</bundles_post_ra>
